<compile_context>
chip_gen: v7x
topology: tpu7x:2x2x1
jax: 0.10.0
libtpu: 0.0.40
codegen_flags: <defaults>
</compile_context>

<pallas_src>
import math
from functools import partial

import jax
import jax.numpy as jnp
from jax.experimental import pallas as pl
from jax.experimental.pallas import tpu as pltpu

# ------------------------- ArcFace constants (from __init__) -----------------
SCALE = 64.0
MARGIN = 0.5
COS_M = math.cos(MARGIN)
SIN_M = math.sin(MARGIN)
THETA = math.cos(math.pi - MARGIN)
SINMM = math.sin(math.pi - MARGIN) * MARGIN
# easy_margin = False (the PyTorch default path)


def _round_up(x: int, m: int) -> int:
    return ((x + m - 1) // m) * m


def _choose_tiles(B: int, C: int) -> tuple[int, int]:
    """Pick (tb, tc): lane-dense C tile + ~2 MiB f32 logits tile per grid step."""
    c128 = _round_up(C, 128)
    tc = c128 if c128 <= 2048 else 1024          # multiple of 128 -> unmasked vst
    target_elems = (2 << 20) // 4                 # ~2 MiB of f32 per logits tile
    tb = (target_elems // tc) // 8 * 8            # f32 sublane: multiple of 8
    tb = max(8, min(tb, 1024))
    tb = min(tb, _round_up(B, 8))
    return tb, tc


def _vmem_limit(tb: int, tc: int) -> int:
    """Scoped VMEM budget: in+out double-buffered + labels + headroom."""
    tile = tb * tc * 4
    need = 4 * tile + (1 << 20)
    # Keep >= 32 MiB (default scoped limit, safe on v7x's 64 MiB physical VMEM),
    # never more than 96 MiB (v5e/v6e have 128 MiB physical).
    return int(min(96 << 20, max(32 << 20, need)))


def _arcface_kernel(logits_ref, labels_ref, out_ref):
    """One (tb, tc) tile of logits + (tb, 1) labels -> adjusted + scaled logits."""
    x = logits_ref[...]                              # (tb, tc) f32 cosines
    lab = labels_ref[...]                            # (tb, 1)  i32
    tc = x.shape[1]

    # Global column index of every element (C may be tiled across grid axis 1).
    col = pl.program_id(1) * tc + jax.lax.broadcasted_iota(jnp.int32, x.shape, 1)
    is_target = (col == lab) & (lab != -1)           # at most one True per row

    # Gather the target cosine per row (0.0 if the target column is not in this
    # C tile / label == -1; discarded by the final select in that case).
    t = jnp.sum(jnp.where(is_target, x, 0.0), axis=-1, keepdims=True)   # (tb, 1)

    # ArcFace margin on the per-row target cosine only (cheap: (tb, 1) vector).
    sin_theta = jnp.sqrt(1.0 - t * t)                # same NaN behavior as torch
    cos_theta_m = t * COS_M - sin_theta * SIN_M
    final_t = jnp.where(t > THETA, cos_theta_m, t - SINMM)              # (tb, 1)

    # Blend the adjusted target logit back in and scale everything.
    out_ref[...] = jnp.where(is_target, final_t, x) * SCALE


@partial(jax.jit, static_argnames=("tb", "tc", "donate_logits"))
def arcface_logits(logits: jax.Array, labels: jax.Array, *,
                   tb: int | None = None, tc: int | None = None,
                   donate_logits: bool = False) -> jax.Array:
    """logits: [B, C] float32 cosines, labels: [B] int (-1 = skip row)."""
    B, C = logits.shape
    labels = labels.astype(jnp.int32)

    auto_tb, auto_tc = _choose_tiles(B, C)
    tb = auto_tb if tb is None else tb
    tc = auto_tc if tc is None else tc

    Bp = _round_up(B, tb)
    Cp = _round_up(C, tc)

    x = logits
    lab = labels
    if Cp != C:
        x = jnp.pad(x, ((0, 0), (0, Cp - C)))
    if Bp != B:
        x = jnp.pad(x, ((0, Bp - B), (0, 0)))
        lab = jnp.pad(lab, (0, Bp - B), constant_values=-1)
    lab2d = lab.reshape(Bp, 1)

    # Alias logits -> output when we made an internal padded copy (always safe)
    # or when the caller explicitly donates its logits buffer.
    alias = {0: 0} if (Bp != B or Cp != C or donate_logits) else {}

    out = pl.pallas_call(
        _arcface_kernel,
        out_shape=jax.ShapeDtypeStruct((Bp, Cp), x.dtype),
        grid_spec=pltpu.PrefetchScalarGridSpec(
            num_scalar_prefetch=0,
            grid=(Bp // tb, Cp // tc),
            in_specs=[
                pl.BlockSpec((tb, tc), lambda i, j: (i, j)),   # logits tile
                pl.BlockSpec((tb, 1), lambda i, j: (i, 0)),    # labels row-tile
            ],
            out_specs=pl.BlockSpec((tb, tc), lambda i, j: (i, j)),
        ),
        compiler_params=pltpu.CompilerParams(
            dimension_semantics=("parallel", "parallel"),
            vmem_limit_bytes=_vmem_limit(tb, tc),
        ),
        input_output_aliases=alias,
    )(x, lab2d)

    if Bp != B or Cp != C:
        out = out[:B, :C]
    return out


def _reference(logits, labels):
    """Pure-JAX reference mirroring the PyTorch forward."""
    B, C = logits.shape
    col = jnp.arange(C)[None, :]
    lab = labels.reshape(B, 1)
    is_target = (col == lab) & (lab != -1)
    t = jnp.sum(jnp.where(is_target, logits, 0.0), axis=-1, keepdims=True)
    sin_theta = jnp.sqrt(1.0 - t * t)
    cos_theta_m = t * COS_M - sin_theta * SIN_M
    final_t = jnp.where(t > THETA, cos_theta_m, t - SINMM)
    return jnp.where(is_target, final_t, logits) * SCALE


if __name__ == "__main__":
    key = jax.random.PRNGKey(0)
    k1, k2, k3, k4 = jax.random.split(key, 4)

    # --- Test 1: small, single tile (auto tiling). ---------------------------
    B, C = 8, 128
    logits = jax.random.uniform(k1, (B, C), jnp.float32, minval=-1.0, maxval=1.0)
    labels = jax.random.randint(k2, (B,), 0, C).astype(jnp.int32)
    labels = labels.at[3].set(-1)               # one ignored row (labels != -1 path)

    out = jax.block_until_ready(arcface_logits(logits, labels))
    ref = _reference(logits, labels)
    assert out.shape == (B, C)
    assert jnp.allclose(out, ref, atol=1e-5, rtol=1e-5), "mismatch vs reference (test 1)"

    # --- Test 2: exercises C-tiling (iota offset) and B/C padding. -----------
    B2, C2 = 20, 384
    logits2 = jax.random.uniform(k3, (B2, C2), jnp.float32, minval=-1.0, maxval=1.0)
    labels2 = jax.random.randint(k4, (B2,), 0, C2).astype(jnp.int32)
    labels2 = labels2.at[0].set(-1)

    out2 = jax.block_until_ready(arcface_logits(logits2, labels2, tb=8, tc=128))
    ref2 = _reference(logits2, labels2)
    assert out2.shape == (B2, C2)
    assert jnp.allclose(out2, ref2, atol=1e-5, rtol=1e-5), "mismatch vs reference (test 2)"

    print("KERNEL_OK")
</pallas_src>

<mosaic_0001>
module attributes {stable_mosaic.version = 11 : i64} {
  func.func @_arcface_kernel(%arg0: i32, %arg1: i32, %arg2: memref<8x128xf32, #tpu.memory_space<vmem>>, %arg3: memref<8x1xi32, #tpu.memory_space<vmem>>, %arg4: memref<8x128xf32, #tpu.memory_space<vmem>>) attributes {dimension_semantics = [#tpu.dimension_semantics<parallel>, #tpu.dimension_semantics<parallel>], iteration_bounds = array<i64: 1, 1>, scalar_prefetch = 0 : i64, scratch_operands = 0 : i64, tpu.core_type = #tpu.core_type<tc>, window_params = [{transform_indices = @transform_0, window_bounds = array<i64: 8, 128>}, {transform_indices = @transform_1, window_bounds = array<i64: 8, 1>}, {transform_indices = @transform_2, window_bounds = array<i64: 8, 128>}]} {
    %c0 = arith.constant 0 : index
    %c0_0 = arith.constant 0 : index
    %0 = vector.load %arg2[%c0, %c0_0] : memref<8x128xf32, #tpu.memory_space<vmem>>, vector<8x128xf32>
    %c0_1 = arith.constant 0 : index
    %c0_2 = arith.constant 0 : index
    %1 = vector.load %arg3[%c0_1, %c0_2] : memref<8x1xi32, #tpu.memory_space<vmem>>, vector<8x1xi32>
    %c128_i32 = arith.constant 128 : i32
    %2 = arith.muli %arg1, %c128_i32 : i32
    %3 = tpu.iota {dimensions = array<i32: 1>} : vector<8x128xi32>
    %4 = vector.broadcast %2 : i32 to vector<8x128xi32>
    %5 = arith.addi %4, %3 : vector<8x128xi32>
    %6 = vector.broadcast %1 : vector<8x1xi32> to vector<8x128xi32>
    %7 = arith.cmpi eq, %5, %6 : vector<8x128xi32>
    %c-1_i32 = arith.constant -1 : i32
    %8 = vector.broadcast %c-1_i32 : i32 to vector<8x1xi32>
    %9 = arith.cmpi ne, %1, %8 : vector<8x1xi32>
    %10 = vector.broadcast %9 : vector<8x1xi1> to vector<8x128xi1>
    %11 = arith.andi %7, %10 : vector<8x128xi1>
    %cst = arith.constant 0.000000e+00 : f32
    %12 = vector.broadcast %cst : f32 to vector<8x128xf32>
    %13 = arith.select %11, %0, %12 : vector<8x128xi1>, vector<8x128xf32>
    %cst_3 = arith.constant dense<0.000000e+00> : vector<8xf32>
    %14 = vector.multi_reduction <add>, %13, %cst_3 [1] : vector<8x128xf32> to vector<8xf32>
    %15 = vector.shape_cast %14 : vector<8xf32> to vector<8x1xf32>
    %16 = arith.mulf %15, %15 : vector<8x1xf32>
    %cst_4 = arith.constant 1.000000e+00 : f32
    %17 = vector.broadcast %cst_4 : f32 to vector<8x1xf32>
    %18 = arith.subf %17, %16 : vector<8x1xf32>
    %19 = math.sqrt %18 : vector<8x1xf32>
    %cst_5 = arith.constant 0.87758255 : f32
    %20 = vector.broadcast %cst_5 : f32 to vector<8x1xf32>
    %21 = arith.mulf %15, %20 : vector<8x1xf32>
    %cst_6 = arith.constant 0.47942555 : f32
    %22 = vector.broadcast %cst_6 : f32 to vector<8x1xf32>
    %23 = arith.mulf %19, %22 : vector<8x1xf32>
    %24 = arith.subf %21, %23 : vector<8x1xf32>
    %cst_7 = arith.constant -0.87758255 : f32
    %25 = vector.broadcast %cst_7 : f32 to vector<8x1xf32>
    %26 = arith.cmpf ogt, %15, %25 : vector<8x1xf32>
    %cst_8 = arith.constant 0.239712775 : f32
    %27 = vector.broadcast %cst_8 : f32 to vector<8x1xf32>
    %28 = arith.subf %15, %27 : vector<8x1xf32>
    %29 = arith.select %26, %24, %28 : vector<8x1xi1>, vector<8x1xf32>
    %30 = vector.shape_cast %29 : vector<8x1xf32> to vector<8x1xf32>
    %31 = vector.broadcast %30 : vector<8x1xf32> to vector<8x128xf32>
    %32 = arith.select %11, %31, %0 : vector<8x128xi1>, vector<8x128xf32>
    %cst_9 = arith.constant 6.400000e+01 : f32
    %33 = vector.broadcast %cst_9 : f32 to vector<8x128xf32>
    %34 = arith.mulf %32, %33 : vector<8x128xf32>
    %c0_10 = arith.constant 0 : index
    %c0_11 = arith.constant 0 : index
    %35 = vector.load %arg4[%c0_10, %c0_11] : memref<8x128xf32, #tpu.memory_space<vmem>>, vector<8x128xf32>
    tpu.vector_store %arg4[%c0_10, %c0_11], %34 {strides = array<i32>} : memref<8x128xf32, #tpu.memory_space<vmem>>, vector<8x128xf32>,
    return
  }
  func.func @transform_0(%arg0: i32, %arg1: i32) -> (i32, i32) {
    %c0_i32 = arith.constant 0 : i32
    return %arg0, %arg1 : i32, i32
  }
  func.func @transform_1(%arg0: i32, %arg1: i32) -> (i32, i32) {
    %c0_i32 = arith.constant 0 : i32
    %c0_i32_0 = arith.constant 0 : i32
    return %arg0, %c0_i32 : i32, i32
  }
  func.func @transform_2(%arg0: i32, %arg1: i32) -> (i32, i32) {
    %c0_i32 = arith.constant 0 : i32
    return %arg0, %arg1 : i32, i32
  }
}

</mosaic_0001>

<bundles_post_ra>
// kernel: arcface_logits.1
= control target key start
LH: loop header
LB: loop body
LE: loop exit
PB: predicated region body
PF: predicated region fallthrough
CT: control target
= control target key end

     0   :  { %s138_s0 = inlined_call_operand.vmem [shape: f32[8,128], index: 0, kind: input, shape index: {}]   ;;  %s139_s1 = inlined_call_operand.vmem [shape: s32[8,1], index: 1, kind: input, shape index: {}]   ;;  %s140_s2 = inlined_call_operand.hbm [shape: f32[8,128], index: 2, kind: output, shape index: {}]  }
   0x1   :  { %v13_v0 = vld [vmem:[%s139_s1] sm:$0xff] }
   0x2   :  { %7 = vsyncpa [#allocation3], 0  ;;  %v95_v1 = vmov 0   ;;  %vm23_vm0 = vcmp.ne.s32.totalorder %v13_v0, 4294967295  ;;  %v15_v3 = vlaneseq  ;;  %v12_v7 = vld [vmem:[%s138_s0] sm:$0xff]  ;;  %s96_s0 = smov [#allocation2]  }
   0x3   :  { %68 = vset.pattern.permute.xlu0 %v95_v1  ;;  %v24_v2 = vsel %vm23_vm0, 1, %v95_v1  ;;  %s57_s1 = sshll.u32 %s96_s0, 4  ;;  %s58_s1 = int_to_ptr.vmem [resolvable:$true] %s57_s1 }
   0x4   :  { %20 = vperm.xlu0 %68, %v13_v0   ;;  %v16_v5 = vand.u32 127, %v15_v3  ;;  %s71_s13 = scalar_lea.vmem %s58_s1, 128  ;;  %p76_p1 = scmp.lt.s32.totalorder %s58_s1, %s58_s1 }
   0x5   :  { %p72_p0 = scmp.ne.s32.totalorder %s58_s1, %s71_s13  ;;  %p77_p2 = scmp.lt.s32.totalorder %s71_s13, %s71_s13 }
   0x7   :  { %p78_p3 = por %p77_p2, %p76_p1 }
   0x8   :  { %26 = vperm.xlu0 %68, %v24_v2  }
   0x9   :  { %p79_p4 = pnand %p78_p3, %p72_p0 }
  0x83   :  { %v21_v4 = vpop.permute.xlu0 %20 }
  0x84   :  { %vm22_vm1 = vcmp.eq.s32.totalorder %v16_v5, %v21_v4 }
  0x87   :  { %v27_v6 = vpop.permute.xlu0 %26 }
  0x88   :  { %vm28_vm2 = vcmp.eq.s32.totalorder %v27_v6, 1 }
  0x89   :  { %vm118_vm3 = vmand %vm22_vm1, %vm28_vm2 }
  0x8a   :  { %v30_v9 = vsel %vm118_vm3, %v12_v7, 0.0 }
  0x8b   :  { %31 = vadd.xlane.f32.xlu1 %v30_v9 }
 0x118   :  { %v32_v10 = vpop.xlane.xlu1 %31 }
 0x119   :  { %v33_v11 = vmul.f32 %v32_v10, %v32_v10  ;;  %v42_v18 = vmul.f32 0.87758255, %v32_v10  ;;  %v65_v21 = vadd.f32 -0.23971277, %v32_v10  ;;  %vm45_vm6 = vcmp.gt.f32.partialorder %v32_v10, -0.87758255 }
 0x11b   :  { %v34_v12 = vsub.f32 1.0, %v33_v11 }
 0x11d   :  { %69 = vrsqrt.f32 %v34_v12  ;;  %vm37_vm4 = vcmp.eq.f32.partialorder %v34_v12, inf  ;;  %v40_v15 = vand.u32 2147483648, %v34_v12  ;;  %vm39_vm5 = vcmp.eq.f32.partialorder %v34_v12, 0.0 }
 0x127   :  { %v70_v13 = vpop.eup %69 }
 0x128   :  { %v36_v14 = vmul.f32 %v70_v13, %v34_v12 }
 0x12a   :  { %v38_v16 = vsel %vm37_vm4, %v34_v12, %v36_v14 }
 0x12b   :  { %v41_v17 = vsel %vm39_vm5, %v40_v15, %v38_v16 }
 0x12c   :  { %v43_v19 = vmul.f32 0.47942555, %v41_v17 }
 0x12e   :  { %v44_v20 = vsub.f32 %v42_v18, %v43_v19 }
 0x130   :  { %v47_v22 = vsel %vm45_vm6, %v44_v20, %v65_v21 }
 0x131   :  { %v48_v23 = vsel %vm118_vm3, %v47_v22, %v12_v7 }
 0x132   :  { %v49_v24 = vmul.f32 64.0, %v48_v23 }
 0x134   :  { %50 = vst [vmem:[#allocation2] sm:$0xff] %v49_v24 }
 0x135   :  { %82 = shalt.err (!%p79_p4)
}
 0x136   :  { %s83_s16 = scalar_lea.hbm %s140_s2, 128 }
 0x137   :  { %p84_p5 = scmp.ne.s32.totalorder %s140_s2, %s83_s16  ;;  %p87_p6 = scmp.lt.u32.totalorder %s83_s16, %s140_s2 }
 0x139   :  { %p89_p7 = pnand %p87_p6, %p84_p5 }
 0x13b   :  { %92 = shalt.err (!%p89_p7)
}
 0x13c   :  { %60 = dma.vmem_to_hbm [thread:$0]  %s58_s1, 128, %s140_s2, [#allocation3]  }
 0x13d   :  { %93 = dma.done.wait [#allocation3], 128  }
 0x13e   :  { %94 = vsyncadd [#allocation3], 4294967168 }
 0x13f   :  { %64 = vsyncpa [#allocation3], 1 }

</bundles_post_ra>
